<compile_context>
chip_gen: v6e
topology: v6e:2x2x1
jax: 0.10.0
libtpu: 0.0.40
codegen_flags: <defaults>
</compile_context>

<pallas_src>
import functools

import jax
import jax.numpy as jnp
from jax import lax
from jax.experimental import pallas as pl
from jax.experimental.pallas import tpu as pltpu

_LANES = 128
_SUBLANES = 8                    # f32 sublane tile
_TARGET_TILE_BYTES = 2 << 20     # per input, per pipeline buffer (~8 MiB resident)
_NUM_CORE_SPLITS = 2             # v7x has 2 TensorCores; harmless on 1-TC chips
_MIN_PALLAS_ELEMENTS = 4096      # below this, one fused XLA reduction wins


def _round_up(x, m):
    return (x + m - 1) // m * m


def _conf_ce_kernel(conf_ref, valid_ref, out_ref, acc_ref, *,
                    block_rows, blocks_per_core, num_rows, needs_mask):
    c = pl.program_id(0)   # core-split index ("parallel")
    i = pl.program_id(1)   # row-block index within this core ("arbitrary")

    @pl.when(i == 0)
    def _init():
        acc_ref[0] = jnp.float32(0.0)

    conf = conf_ref[...].astype(jnp.float32)
    valid = valid_ref[...].astype(jnp.float32)

    if needs_mask:
        # Global (unclamped) row index of every row in this block.  Rows past
        # the real batch extent (ragged last block, or the duplicated clamped
        # block on the second core split) get conf=1 / valid=0 *before* the
        # log, so they contribute exactly 0 and can never produce NaN/Inf.
        row0 = (c * blocks_per_core + i) * block_rows
        rows = row0 + lax.broadcasted_iota(jnp.int32, (block_rows, 1), 0)
        in_bounds = rows < num_rows
        conf = jnp.where(in_bounds, conf, jnp.float32(1.0))
        valid = jnp.where(in_bounds, valid, jnp.float32(0.0))

    # Hot path: VPU mul + EUP log + reduce; fully hidden under the block DMA.
    acc_ref[0] += jnp.sum(valid * -jnp.log(conf + 1e-6))

    @pl.when(i == blocks_per_core - 1)
    def _store():
        # One lane-dense (8, 128) store per core; the wrapper reads [0, 0].
        out_ref[...] = jnp.full(out_ref.shape, acc_ref[0], out_ref.dtype)


def conf_ce_loss(confidence, joint_valid, *, use_pallas=None):
    """confidence: (B, J); joint_valid: (B, J*3)  ->  scalar f32 loss."""
    b = confidence.shape[0]
    # TODO(synk): the stride-3 z-slice stays in XLA (in-kernel de-interleave is
    # XLU-heavy); allow_input_fusion below lets XLA fuse it into the kernel.
    jv = joint_valid.reshape(b, -1, 3)[:, :, 2]            # (B, J) z-visibility flag
    j = jv.shape[1]
    assert confidence.shape == (b, j), (confidence.shape, jv.shape)
    n = b * j

    if use_pallas is None:
        use_pallas = n >= _MIN_PALLAS_ELEMENTS
    if not use_pallas:
        # Tiny inputs: let XLA fuse slice + log + mean into a single launch.
        return jnp.mean(jv.astype(jnp.float32)
                        * -jnp.log(confidence.astype(jnp.float32) + 1e-6))

    # ---- block sizing --------------------------------------------------
    lanes = _round_up(j, _LANES)                           # VMEM lanes per row
    rows_by_vmem = max(
        _SUBLANES,
        (_TARGET_TILE_BYTES // (4 * lanes)) // _SUBLANES * _SUBLANES)
    block_rows = b if b <= rows_by_vmem else rows_by_vmem  # full dim or mult of 8
    num_row_blocks = pl.cdiv(b, block_rows)
    blocks_per_core = pl.cdiv(num_row_blocks, _NUM_CORE_SPLITS)
    needs_mask = (b % block_rows != 0) or (num_row_blocks % _NUM_CORE_SPLITS != 0)
    last_block = num_row_blocks - 1

    def _in_map(c, i):
        # Clamp so a fully out-of-range logical block re-reads the last real
        # block; its rows are masked to zero contribution in-kernel.
        return (jnp.minimum(c * blocks_per_core + i, last_block), 0)

    kernel = functools.partial(
        _conf_ce_kernel,
        block_rows=block_rows,
        blocks_per_core=blocks_per_core,
        num_rows=b,
        needs_mask=needs_mask,
    )

    out = pl.pallas_call(
        kernel,
        out_shape=jax.ShapeDtypeStruct(
            (_NUM_CORE_SPLITS * _SUBLANES, _LANES), jnp.float32),
        grid_spec=pltpu.PrefetchScalarGridSpec(
            num_scalar_prefetch=0,
            grid=(_NUM_CORE_SPLITS, blocks_per_core),
            in_specs=[
                pl.BlockSpec((block_rows, j), _in_map),
                pl.BlockSpec((block_rows, j), _in_map),
            ],
            out_specs=pl.BlockSpec((_SUBLANES, _LANES), lambda c, i: (c, 0)),
            scratch_shapes=[pltpu.SMEM((1,), jnp.float32)],
        ),
        compiler_params=pltpu.CompilerParams(
            dimension_semantics=("parallel", "arbitrary"),
            # Let XLA fuse the stride-3 z-slice producer into the kernel input.
            allow_input_fusion=[False, True],
        ),
    )(confidence, jv)

    partials = out.reshape(_NUM_CORE_SPLITS, _SUBLANES, _LANES)[:, 0, 0]
    return jnp.sum(partials) * jnp.float32(1.0 / n)


def _reference(confidence, joint_valid):
    b = confidence.shape[0]
    jv = joint_valid.reshape(b, -1, 3)[:, :, 2]
    return jnp.mean(jv * -jnp.log(confidence + 1e-6))


if __name__ == "__main__":
    key = jax.random.PRNGKey(0)
    k1, k2, k3, k4 = jax.random.split(key, 4)

    # Test 1: small shapes, forced through the Pallas path.
    batch, n_joints = 2, 64
    confidence = jax.random.uniform(k1, (batch, n_joints), dtype=jnp.float32,
                                    minval=0.05, maxval=1.0)
    joint_valid = (jax.random.uniform(k2, (batch, n_joints * 3),
                                      dtype=jnp.float32) > 0.3).astype(jnp.float32)

    loss = conf_ce_loss(confidence, joint_valid, use_pallas=True)
    jax.block_until_ready(loss)
    ref = _reference(confidence, joint_valid)
    assert jnp.allclose(loss, ref, rtol=1e-5, atol=1e-6), (loss, ref)

    # Auto-dispatch (tiny input -> fused XLA path) must agree too.
    loss_auto = conf_ce_loss(confidence, joint_valid)
    jax.block_until_ready(loss_auto)
    assert jnp.allclose(loss_auto, ref, rtol=1e-5, atol=1e-6), (loss_auto, ref)

    # Test 2: odd shapes (B not a multiple of 8, J not a multiple of 128).
    batch2, n_joints2 = 10, 81
    confidence2 = jax.random.uniform(k3, (batch2, n_joints2), dtype=jnp.float32,
                                     minval=0.05, maxval=1.0)
    joint_valid2 = (jax.random.uniform(k4, (batch2, n_joints2 * 3),
                                       dtype=jnp.float32) > 0.3).astype(jnp.float32)
    loss2 = conf_ce_loss(confidence2, joint_valid2, use_pallas=True)
    jax.block_until_ready(loss2)
    ref2 = _reference(confidence2, joint_valid2)
    assert jnp.allclose(loss2, ref2, rtol=1e-5, atol=1e-6), (loss2, ref2)

    print("KERNEL_OK")
</pallas_src>

<mosaic_0001>
module attributes {stable_mosaic.version = 11 : i64} {
  func.func @_conf_ce_kernel(%arg0: i32, %arg1: i32, %arg2: memref<2x64xf32, #tpu.memory_space<vmem>>, %arg3: memref<2x64xf32, #tpu.memory_space<vmem>>, %arg4: memref<8x128xf32, #tpu.memory_space<vmem>>, %arg5: memref<1xf32, #tpu.memory_space<smem>>) attributes {dimension_semantics = [#tpu.dimension_semantics<parallel>, #tpu.dimension_semantics<arbitrary>], iteration_bounds = array<i64: 2, 1>, scalar_prefetch = 0 : i64, scratch_operands = 1 : i64, tpu.core_type = #tpu.core_type<tc>, window_params = [{transform_indices = @transform_0, window_bounds = array<i64: 2, 64>}, {transform_indices = @transform_1, window_bounds = array<i64: 2, 64>}, {transform_indices = @transform_2, window_bounds = array<i64: 8, 128>}]} {
    %c0_i32 = arith.constant 0 : i32
    %0 = arith.cmpi eq, %arg1, %c0_i32 : i32
    %1 = arith.extui %0 : i1 to i32
    %c0_i32_0 = arith.constant 0 : i32
    %2 = arith.cmpi ne, %1, %c0_i32_0 : i32
    scf.if %2 {
      %cst_13 = arith.constant 0.000000e+00 : f32
      %c0_14 = arith.constant 0 : index
      %37 = memref.load %arg5[%c0_14] : memref<1xf32, #tpu.memory_space<smem>>
      memref.store %cst_13, %arg5[%c0_14] : memref<1xf32, #tpu.memory_space<smem>>
    } else {
    }
    %c0 = arith.constant 0 : index
    %c0_1 = arith.constant 0 : index
    %3 = vector.load %arg2[%c0, %c0_1] : memref<2x64xf32, #tpu.memory_space<vmem>>, vector<2x64xf32>
    %c0_2 = arith.constant 0 : index
    %c0_3 = arith.constant 0 : index
    %4 = vector.load %arg3[%c0_2, %c0_3] : memref<2x64xf32, #tpu.memory_space<vmem>>, vector<2x64xf32>
    %c1_i32 = arith.constant 1 : i32
    %5 = arith.muli %arg0, %c1_i32 : i32
    %6 = arith.addi %5, %arg1 : i32
    %c2_i32 = arith.constant 2 : i32
    %7 = arith.muli %6, %c2_i32 : i32
    %8 = tpu.iota {dimensions = array<i32: 0>} : vector<2x1xi32>
    %9 = vector.broadcast %7 : i32 to vector<2x1xi32>
    %10 = arith.addi %9, %8 : vector<2x1xi32>
    %c2_i32_4 = arith.constant 2 : i32
    %11 = vector.broadcast %c2_i32_4 : i32 to vector<2x1xi32>
    %12 = arith.cmpi slt, %10, %11 : vector<2x1xi32>
    %cst = arith.constant 1.000000e+00 : f32
    %13 = vector.shape_cast %12 : vector<2x1xi1> to vector<2x1xi1>
    %14 = vector.broadcast %13 : vector<2x1xi1> to vector<2x64xi1>
    %15 = vector.broadcast %cst : f32 to vector<2x64xf32>
    %16 = arith.select %14, %3, %15 : vector<2x64xi1>, vector<2x64xf32>
    %cst_5 = arith.constant 0.000000e+00 : f32
    %17 = vector.shape_cast %12 : vector<2x1xi1> to vector<2x1xi1>
    %18 = vector.broadcast %17 : vector<2x1xi1> to vector<2x64xi1>
    %19 = vector.broadcast %cst_5 : f32 to vector<2x64xf32>
    %20 = arith.select %18, %4, %19 : vector<2x64xi1>, vector<2x64xf32>
    %c0_6 = arith.constant 0 : index
    %21 = memref.load %arg5[%c0_6] : memref<1xf32, #tpu.memory_space<smem>>
    %cst_7 = arith.constant 9.99999997E-7 : f32
    %22 = vector.broadcast %cst_7 : f32 to vector<2x64xf32>
    %23 = arith.addf %16, %22 : vector<2x64xf32>
    %24 = math.log %23 : vector<2x64xf32>
    %cst_8 = arith.constant 0.000000e+00 : f32
    %25 = vector.broadcast %cst_8 : f32 to vector<2x64xf32>
    %26 = arith.subf %25, %24 : vector<2x64xf32>
    %27 = arith.mulf %20, %26 : vector<2x64xf32>
    %28 = vector.shape_cast %27 : vector<2x64xf32> to vector<1x2x64xf32>
    %cst_9 = arith.constant dense<0.000000e+00> : vector<1xf32>
    %29 = vector.multi_reduction <add>, %28, %cst_9 [1, 2] : vector<1x2x64xf32> to vector<1xf32>
    %30 = vector.shape_cast %29 : vector<1xf32> to vector<1x1x1xf32>
    %31 = vector.extract %30[0, 0, 0] : f32 from vector<1x1x1xf32>
    %32 = arith.addf %21, %31 : f32
    %c0_10 = arith.constant 0 : index
    %33 = memref.load %arg5[%c0_10] : memref<1xf32, #tpu.memory_space<smem>>
    memref.store %32, %arg5[%c0_10] : memref<1xf32, #tpu.memory_space<smem>>
    %c0_i32_11 = arith.constant 0 : i32
    %34 = arith.cmpi eq, %arg1, %c0_i32_11 : i32
    %35 = arith.extui %34 : i1 to i32
    %c0_i32_12 = arith.constant 0 : i32
    %36 = arith.cmpi ne, %35, %c0_i32_12 : i32
    scf.if %36 {
      %c0_13 = arith.constant 0 : index
      %37 = memref.load %arg5[%c0_13] : memref<1xf32, #tpu.memory_space<smem>>
      %38 = vector.broadcast %37 : f32 to vector<8x128xf32>
      %c0_14 = arith.constant 0 : index
      %c0_15 = arith.constant 0 : index
      %39 = vector.load %arg4[%c0_14, %c0_15] : memref<8x128xf32, #tpu.memory_space<vmem>>, vector<8x128xf32>
      tpu.vector_store %arg4[%c0_14, %c0_15], %38 {strides = array<i32>} : memref<8x128xf32, #tpu.memory_space<vmem>>, vector<8x128xf32>,
    } else {
    }
    return
  }
  func.func @transform_0(%arg0: i32, %arg1: i32) -> (i32, i32) {
    %c1_i32 = arith.constant 1 : i32
    %0 = arith.muli %arg0, %c1_i32 : i32
    %1 = arith.addi %0, %arg1 : i32
    %c0_i32 = arith.constant 0 : i32
    %2 = arith.minsi %1, %c0_i32 : i32
    %c0_i32_0 = arith.constant 0 : i32
    %c0_i32_1 = arith.constant 0 : i32
    return %2, %c0_i32_0 : i32, i32
  }
  func.func @transform_1(%arg0: i32, %arg1: i32) -> (i32, i32) {
    %c1_i32 = arith.constant 1 : i32
    %0 = arith.muli %arg0, %c1_i32 : i32
    %1 = arith.addi %0, %arg1 : i32
    %c0_i32 = arith.constant 0 : i32
    %2 = arith.minsi %1, %c0_i32 : i32
    %c0_i32_0 = arith.constant 0 : i32
    %c0_i32_1 = arith.constant 0 : i32
    return %2, %c0_i32_0 : i32, i32
  }
  func.func @transform_2(%arg0: i32, %arg1: i32) -> (i32, i32) {
    %c0_i32 = arith.constant 0 : i32
    %c0_i32_0 = arith.constant 0 : i32
    return %arg0, %c0_i32 : i32, i32
  }
}

</mosaic_0001>

<bundles_post_ra>
// kernel: tpu_custom_call.1
= control target key start
LH: loop header
LB: loop body
LE: loop exit
PB: predicated region body
PF: predicated region fallthrough
CT: control target
= control target key end

     0   :  { %7 = vsyncpa [#allocation4], 0  ;;  %s874_s0 = inlined_call_operand.hbm [shape: f32[2,64], index: 0, kind: input, shape index: {}]   ;;  %s875_s1 = inlined_call_operand.hbm [shape: f32[2,64], index: 1, kind: input, shape index: {}]   ;;  %s876_s2 = inlined_call_operand.hbm [shape: f32[16,128], index: 2, kind: output, shape index: {}]  }
   0x1   :  { %9 = vsyncpa [#allocation4 + $0x1], 0 }
   0x2   :  { %10 = vsyncpa [#allocation7], 0 }
   0x3   :  { %12 = vsyncpa [#allocation7 + $0x1], 0 }
   0x4   :  { %13 = vsyncpa [#allocation5], 0 }
   0x5   :  { %15 = vsyncpa [#allocation5 + $0x1], 0  ;;  %s685_s9 = smov 0   ;;  %s687_s10 = smov 0  }
   0x6   :  { %s689_s11 = smov 0   ;;  %s691_s12 = smov 0  }
   0x7   :  { %s693_s13 = smov 0   ;;  %s695_s14 = smov 0  }
   0x8   :  { %s697_s15 = smov 0   ;;  %s699_s16 = smov 0  }
   0x9 LB: > { %s392_s17 = sadd.s32 4294967295, %s665_s16   ;;  %s393_s18 = sadd.s32 4294967294, %s665_s16   ;;  %s665_s16 = sphi %s699_s16, %s21_s16   ;;  %s661_s15 = sphi %s697_s15, %s897_s15   ;;  %s657_s14 = sphi %s695_s14, %s896_s14   ;;  %s653_s13 = sphi %s693_s13, %s864_s13   ;;  %s649_s12 = sphi %s691_s12, %s895_s12   ;;  %s645_s11 = sphi %s689_s11, %s894_s11   ;;  %s641_s10 = sphi %s687_s10, %s893_s10   ;;  %s637_s9 = sphi %s685_s9, %s892_s9  }
   0xa   : > { %s33_s19 = sadd.s32 1, %s661_s15  ;;  %p634_p1 = scmp.ne.s32.totalorder %s653_s13, 0 }
   0xb   : > { %p35_p0 = scmp.ge.s32.totalorder %s33_s19, 2  ;;  %p54_p2 = scmp.eq.s32.totalorder %s665_s16, 0 }
   0xc   : > { %p59_p3 = scmp.ne.s32.totalorder %s653_s13, %s649_s12  ;;  %p60_p5 = scmp.eq.s32.totalorder %s392_s17, 0 }
   0xd   : > { %s899_s19 = smov (%p35_p0, %s33_s19), 0  ;;  %p731_p4 = por %p634_p1, %p54_p2 }
   0xe   : > { %p735_p6 = por %p60_p5, %p59_p3  ;;  %s101_s22 = ssub.s32 %s661_s15, %s899_s19 }
   0xf   : > { %p102_p7 = scmp.eq.s32.totalorder %s101_s22, 0  ;;  %s104_s23 = sadd.s32 1, %s645_s11 }
  0x10   : > { %s880_s21 = scalar_select %p735_p6, 1, 0 }
  0x11   : > { %s743_s24 = scalar_select %p102_p7, %s645_s11, %s104_s23  }
  0x12   : > { %p114_p8 = scmp.ne.s32.totalorder %s645_s11, %s641_s10  ;;  %p115_p9 = scmp.eq.s32.totalorder %s392_s17, 1 }
  0x13   : > { %p120_p10 = scmp.ne.s32.totalorder %s641_s10, %s637_s9  ;;  %p121_p11 = scmp.eq.s32.totalorder %s393_s18, 1 }
  0x14   : > { %p749_p12 = por %p115_p9, %p114_p8  ;;  %p428_p1 = scmp.lt.s32.totalorder %s665_s16, 2 }
  0x15   : > { %p754_p0 = por %p121_p11, %p120_p10  ;;  %s667_s27 = smov [#allocation3]  }
  0x16   : > { %s881_s25 = scalar_select %p749_p12, 1, 0 }
  0x17   : > { %s882_s26 = scalar_select %p754_p0, 1, 0 }
  0x18   : > { %s155_s28 = sshll.u32 %s667_s27, 4  ;;  %p761_p2 = pnand %p428_p1, %p731_p4  ;;  %s156_s28 = int_to_ptr.vmem [resolvable:$true] %s155_s28 }
  0x19   : > { %s504_s4 = scalar_lea.hbm %s874_s0, 32 }
  0x1a   : > { %p505_p7 = scmp.ne.s32.totalorder %s874_s0, %s504_s4  ;;  %p506_p8 = pneg %p761_p2 }
  0x1b   : > { %p511_p10 = scmp.lt.s32.totalorder %s504_s4, %s504_s4 }
  0x1c   : > { %p507_p4 = pnand %p506_p8, %p505_p7 }
  0x1e   : > { %p508_p9 = pneg %p507_p4 }
  0x20   : > { %p513_p11 = pnand %p511_p10, %p508_p9 }
  0x22   : > { %516 = shalt.err (!%p513_p11)
}
  0x23   : > { %s517_s7 = scalar_lea.vmem %s156_s28, 32  ;;  %s524_s8 = scalar_lea.vmem %s156_s28, 64 }
  0x24   : > { %p518_p1 = scmp.ne.s32.totalorder %s156_s28, %s517_s7  ;;  %p525_p5 = scmp.lt.s32.totalorder %s156_s28, %s156_s28 }
  0x25   : > { %p526_p0 = scmp.lt.s32.totalorder %s524_s8, %s517_s7 }
  0x26   : > { %p520_p13 = pnand %p518_p1, %p506_p8 }
  0x27   : > { %p527_p12 = por %p526_p0, %p525_p5 }
  0x28   : > { %p521_p3 = pneg %p520_p13 }
  0x2a   : > { %p528_p6 = pnand %p527_p12, %p521_p3 }
  0x2c   : > { %531 = shalt.err (!%p528_p6)
}
  0x2d   : > { %420 = dma.hbm_to_vmem [thread:$0]  (!%p761_p2), %s874_s0, 32, %s156_s28, [#allocation4]  }
  0x2e   : > { %p884_p7 = scmp.lt.s32.totalorder %s665_s16, 3  ;;  %p885_p4 = scmp.ge.s32.totalorder %s665_s16, 1 }
  0x2f   : > { %s668_s20 = smov [#allocation6]   ;;  %s532_s30 = scalar_lea.hbm %s875_s1, 32 }
  0x30   : > { %p790_p9 = pnand %p885_p4, %p884_p7  ;;  %s176_s22 = sshll.u32 %s668_s20, 4  ;;  %s177_s22 = int_to_ptr.vmem [resolvable:$true] %s176_s22 }
  0x31   : > { %p533_p6 = scmp.ne.s32.totalorder %s875_s1, %s532_s30  ;;  %p539_p0 = scmp.lt.s32.totalorder %s532_s30, %s532_s30 }
  0x32   : > { %s886_s18 = scalar_select %p790_p9, 1, 0 }
  0x33   : > { %p535_p12 = pnand %p533_p6, %p506_p8 }
  0x35   : > { %p536_p13 = pneg %p535_p12 }
  0x37   : > { %p541_p3 = pnand %p539_p0, %p536_p13 }
  0x39   : > { %544 = shalt.err (!%p541_p3)
}
  0x3a   : > { %s545_s28 = scalar_lea.vmem %s177_s22, 32  ;;  %s552_s5 = scalar_lea.vmem %s177_s22, 64 }
  0x3b   : > { %p546_p5 = scmp.ne.s32.totalorder %s177_s22, %s545_s28  ;;  %p553_p1 = scmp.lt.s32.totalorder %s177_s22, %s177_s22 }
  0x3c   : > { %p554_p7 = scmp.lt.s32.totalorder %s552_s5, %s545_s28 }
  0x3d   : > { %p548_p10 = pnand %p546_p5, %p506_p8 }
  0x3e   : > { %p555_p4 = por %p554_p7, %p553_p1 }
  0x3f   : > { %p549_p11 = pneg %p548_p10 }
  0x41   : > { %p556_p9 = pnand %p555_p4, %p549_p11 }
  0x43   : > { %559 = shalt.err (!%p556_p9)
}
  0x44   : > { %423 = dma.hbm_to_vmem [thread:$0]  (!%p761_p2), %s875_s1, 32, %s177_s22, [#allocation7]  }
  0x45   : > { %p887_p6 = scmp.ne.s32.totalorder %s886_s18, 0 }
  0x46   : > { %s187_s8 = sand.u32 (!%p887_p6), 1, %s653_s13   ;;  %p888_p8 = scmp.ne.s32.totalorder (!%p887_p6), %s880_s21, 0 }
  0x47   : > { %185 = sbr.rel (%p887_p6) target bundleno = 324 (0x144), region = 28  ;;  %s401_s12 = sshll.u32 (!%p887_p6), %s187_s8, 1 }
  0x48   : > { %s188_s17 = scalar_lea.sflag (!%p887_p6), [#allocation4], %s187_s8  ;;  %s191_s20 = scalar_lea.vmem (!%p887_p6), [#allocation3], %s401_s12 }
  0x4c   : > { %623 = dma.done.wait (%p888_p8), %s188_s17, 32  }
  0x4d   : > { %625 = vsyncadd (%p888_p8), %s188_s17, 4294967264  ;;  %s197_s29 = scalar_lea.sflag [#allocation7], %s187_s8  ;;  %s200_s23 = scalar_lea.vmem [#allocation6], %s401_s12 }
  0x4e   : > { %627 = dma.done.wait (%p888_p8), %s197_s29, 32  }
  0x4f   : > { %629 = vsyncadd (%p888_p8), %s197_s29, 4294967264  ;;  %s404_s18 = sshll.u32 %s657_s14, 1  ;;  %v242_v0 = vlaneseq  ;;  %v238_v4 = vld [vmem:[%s191_s20] sm:$0x3]  ;;  %v239_v7 = vld [vmem:[%s200_s23] sm:$0x3] }
  0x50   : > { %v244_v1 = vstv %s404_s18  ;;  %vm257_vm1 = vcmask 517120   ;;  %s223_s21 = sand.u32 1, %s641_s10   ;;  %s406_s3 = sshll.u32 %s657_s14, 7 }
  0x51   : > { %v243_v2 = vshrl.u32 %v242_v0, 7  ;;  %s403_s22 = sshll.u32 %s223_s21, 3  ;;  %s289_s6 = scalar_lea.hbm %s876_s2, %s406_s3 }
  0x52   : > { %s225_s27 = scalar_lea.vmem [#allocation8], %s403_s22  ;;  %s278_s7 = scalar_lea.sflag [#allocation5], %s223_s21 }
  0x53   : > { %v245_v3 = vadd.s32 %v244_v1, %v243_v2  ;;  %s291_s30 = sshll.u32 %s225_s27, 4  ;;  %p889_p9 = scmp.ne.s32.totalorder %s881_s25, 0  ;;  %s825_s30 = int_to_ptr.vmem [resolvable:$true] %s291_s30 }
  0x54   : > { %s560_s8 = scalar_lea.vmem %s825_s30, 128  ;;  %s669_s12 = smov [#allocation8]  }
  0x55   : > { %vm246_vm0 = vcmp.lt.s32.totalorder %v245_v3, 2  ;;  %p561_p2 = scmp.ne.s32.totalorder %s825_s30, %s560_s8  ;;  %s564_s14 = sshll.u32 %s669_s12, 4  ;;  %s565_s14 = int_to_ptr.vmem [resolvable:$false] %s564_s14 }
  0x56   : > { %v249_v5 = vsel %vm246_vm0, %v238_v4, 1.0  ;;  %v250_v10 = vsel %vm246_vm0, %v239_v7, 0.0  ;;  %s566_s17 = scalar_lea.vmem %s565_s14, 256  ;;  %p567_p0 = scmp.lt.s32.totalorder %s825_s30, %s565_s14 }
  0x57   : > { %v252_v6 = vadd.f32 1e-06, %v249_v5  ;;  %p562_p12 = pnand %p561_p2, %p889_p9  ;;  %p568_p3 = scmp.lt.s32.totalorder %s566_s17, %s560_s8 }
  0x59   : > { %502 = vlog2.f32 %v252_v6  ;;  %p563_p13 = pneg %p562_p12  ;;  %p569_p5 = por %p568_p3, %p567_p0 }
  0x5b   : > { %p570_p10 = pnand %p569_p5, %p563_p13 }
  0x66   : > { %v503_v8 = vpop.eup %502 }
  0x67   : > { %v254_v9 = vmul.f32 0.6931472, %v503_v8 }
  0x69   : > { %v255_v11 = vsub.f32 0.0, %v254_v9 }
  0x6b   : > { %v256_v12 = vmul.f32 %v255_v11, %v250_v10 }
  0x6d   : > { %v258_v13 = vsel %vm257_vm1, %v256_v12, 0.0 }
  0x6e   : > { %259 = vadd.xlane.f32.xlu0 %v258_v13 }
  0xf7   : > { %v260_v14 = vpop.xlane.xlu0 %259 }
  0xf8   : > { %v261_v15 = vrot.slane %v260_v14, 4 }
  0xfa   : > { %v262_v16 = vadd.f32 %v261_v15, %v260_v14 }
  0xfc   : > { %v263_v17 = vrot.slane %v262_v16, 2 }
  0xfe   : > { %v264_v18 = vadd.f32 %v263_v17, %v262_v16 }
 0x100   : > { %v265_v19 = vrot.slane %v264_v18, 1 }
 0x102   : > { %v266_v20 = vadd.f32 %v265_v19, %v264_v18 }
 0x104   : > { %409 = vpush %v266_v20 }
 0x135   : > { %s410_s4 = spop %409 }
 0x136   : > { %v275_v21 = vstv %s410_s4 }
 0x137   : > { %276 = vst [vmem:[%s225_s27] sm:$0xff] %v275_v21 }
 0x138   : > { %573 = shalt.err (!%p570_p10)
}
 0x139   : > { %s574_s20 = scalar_lea.hbm %s289_s6, 128  ;;  %s578_s18 = scalar_lea.hbm %s876_s2, 256 }
 0x13a   : > { %p575_p11 = scmp.ne.s32.totalorder %s289_s6, %s574_s20  ;;  %p579_p4 = scmp.lt.s32.totalorder %s289_s6, %s876_s2 }
 0x13b   : > { %p580_p6 = scmp.lt.s32.totalorder %s578_s18, %s574_s20 }
 0x13c   : > { %p576_p1 = pnand %p575_p11, %p889_p9 }
 0x13d   : > { %p581_p8 = por %p580_p6, %p579_p4 }
 0x13e   : > { %p577_p7 = pneg %p576_p1 }
 0x140   : > { %p582_p2 = pnand %p581_p8, %p577_p7 }
 0x142   : > { %585 = shalt.err (!%p582_p2)
}
 0x143   : > { %415 = dma.vmem_to_hbm [thread:$0]  (%p889_p9), %s825_s30, 128, %s289_s6, %s278_s7  }
 0x144 PF: > { %s303_s27 = sand.u32 1, %s637_s9   ;;  %p890_p12 = scmp.ne.s32.totalorder %s882_s26, 0 }
 0x145   : > { %p891_p13 = scmp.ge.s32.totalorder %s665_s16, 2  ;;  %s304_s3 = scalar_lea.sflag [#allocation5], %s303_s27 }
 0x147   : > { %p425_p0 = pnand %p891_p13, %p890_p12 }
 0x149   : > { %p426_p3 = pneg %p425_p0 }
 0x14b   : > { %631 = dma.done.wait (%p426_p3), %s304_s3, 128  }
 0x14c   : > { %633 = vsyncadd (%p426_p3), %s304_s3, 4294967168  ;;  %s21_s16 = sadd.s32 1, %s665_s16   ;;  %s892_s9 = smov %s641_s10 }
 0x14d   : > { %p18_p5 = scmp.ge.s32.totalorder %s21_s16, 4   ;;  %s893_s10 = smov %s645_s11 }
 0x14e   : > { %s894_s11 = smov %s743_s24  ;;  %s895_s12 = smov %s653_s13 }
 0x14f   : > { %s864_s13 = smov 0   ;;  %s896_s14 = smov %s661_s15 }
 0x150   : > { %s897_s15 = smov %s899_s19  ;;  %20 = sbr.rel (!%p18_p5) target bundleno = 9 (0x9), region = 96 }
 0x155   :  { %309 = vsyncpa [#allocation4], 1 }
 0x156   :  { %311 = vsyncpa [#allocation4 + $0x1], 1 }
 0x157   :  { %312 = vsyncpa [#allocation7], 1 }
 0x158   :  { %314 = vsyncpa [#allocation7 + $0x1], 1 }
 0x159   :  { %315 = vsyncpa [#allocation5], 1 }
 0x15a   :  { %317 = vsyncpa [#allocation5 + $0x1], 1 }

</bundles_post_ra>
